<compile_context>
chip_gen: v5e
topology: v5e:2x2
jax: 0.10.0
libtpu: 0.0.40
codegen_flags: <defaults>
</compile_context>

<pallas_src>
from functools import partial

import jax
import jax.numpy as jnp
from jax.experimental import pallas as pl
from jax.experimental.pallas import tpu as pltpu

IN_DIM = 28 * 28   # 784

# Layer sizes exactly as in the PyTorch module.
LAYER_DIMS = [
    (IN_DIM, 128),   # encoder L0 + ReLU
    (128, 64),       # encoder L1 + ReLU
    (64, 12),        # encoder L2 + ReLU
    (12, 3),         # encoder L3 (no activation)
    (3, 12),         # decoder L4 + ReLU
    (12, 64),        # decoder L5 + ReLU
    (64, 128),       # decoder L6 + ReLU
    (128, IN_DIM),   # decoder L7 + Sigmoid
]
NUM_LAYERS = len(LAYER_DIMS)
RELU_AFTER = (0, 1, 2, 4, 5, 6)

# After fusing L3/L4 the kernel sees 7 layers: ReLU after 0..5, sigmoid after 6.
NUM_FUSED = 7


def _round_up(n, m):
    return ((n + m - 1) // m) * m


def autoencoder_kernel(x_ref, *refs):
    """One batch tile of the full forward pass.

    x_ref : (tile_b, 784) f32 input tile
    refs  : w0..w6 (bf16), b0..b6 (f32), o_ref  (weights/biases VMEM-resident)
    """
    w_refs = refs[:NUM_FUSED]
    b_refs = refs[NUM_FUSED:2 * NUM_FUSED]
    o_ref = refs[-1]

    h = x_ref[...]
    # Heterogeneous layer shapes -> keep the Python loop unrolled (full LLO
    # scheduler visibility; tiny mid-network matmuls hide under L0/L6 work).
    for i in range(NUM_FUSED):
        h = jnp.dot(h.astype(jnp.bfloat16), w_refs[i][...],
                    preferred_element_type=jnp.float32)   # MXU, bf16 in / f32 acc
        h = h + b_refs[i][...]                            # bias broadcast (VPU, f32)
        if i < NUM_FUSED - 1:
            h = jnp.maximum(h, 0.0)                       # ReLU (VPU)
    # sigmoid(h) = 0.5 * (1 + tanh(h/2)): one EUP push per vreg, exact.
    o_ref[...] = (0.5 * (jnp.tanh(0.5 * h) + 1.0)).astype(o_ref.dtype)


def prepare_params(weights, biases):
    """One-time (outside-jit) prep: fuse the 12->3->12 bottleneck exactly
    (no nonlinearity between L3 and L4) and cast weights to bf16."""
    w = [jnp.asarray(wi, jnp.float32) for wi in weights]
    b = [jnp.asarray(bi, jnp.float32) for bi in biases]
    w34 = w[3] @ w[4]                 # (12, 12), exact fusion in f32
    b34 = b[3] @ w[4] + b[4]          # (1, 12)
    ws = [w[0], w[1], w[2], w34, w[5], w[6], w[7]]
    bs = [b[0], b[1], b[2], b34, b[5], b[6], b[7]]
    ws = tuple(wi.astype(jnp.bfloat16) for wi in ws)      # MXU-native operands
    bs = tuple(bs)                                         # biases stay f32
    return ws, bs


@partial(jax.jit, static_argnames=("tile_b",))
def autoencoder_forward(x, ws, bs, tile_b=512):
    """x: (B, 784) f32, (ws, bs) from prepare_params -> (B, 784) f32."""
    B = x.shape[0]
    tile = min(tile_b, _round_up(max(B, 1), 8))
    b_pad = _round_up(B, tile)
    grid = (b_pad // tile,)

    # Batch-only padding, and only when tile does not divide B.
    if b_pad != B:
        x = jnp.pad(x, ((0, b_pad - B), (0, 0)))

    x_spec = pl.BlockSpec((tile, IN_DIM), lambda i: (i, 0))
    o_spec = pl.BlockSpec((tile, IN_DIM), lambda i: (i, 0))
    # Constant index_maps -> weights/biases stay resident across grid steps.
    w_specs = [pl.BlockSpec(wi.shape, lambda i: (0, 0)) for wi in ws]
    b_specs = [pl.BlockSpec(bi.shape, lambda i: (0, 0)) for bi in bs]

    flops_per_row = 2 * sum(wi.shape[0] * wi.shape[1] for wi in ws)
    param_bytes = (sum(wi.size * wi.dtype.itemsize for wi in ws)
                   + sum(bi.size * bi.dtype.itemsize for bi in bs))
    cost = pl.CostEstimate(
        flops=flops_per_row * b_pad,
        transcendentals=b_pad * IN_DIM,
        bytes_accessed=2 * b_pad * IN_DIM * 4 + param_bytes)

    out = pl.pallas_call(
        autoencoder_kernel,
        out_shape=jax.ShapeDtypeStruct((b_pad, IN_DIM), jnp.float32),
        grid=grid,
        in_specs=[x_spec] + w_specs + b_specs,
        out_specs=o_spec,
        compiler_params=pltpu.CompilerParams(
            dimension_semantics=("parallel",)),
        cost_estimate=cost,
    )(x, *ws, *bs)

    if b_pad != B:
        out = out[:B]
    return out


def init_params(key):
    """Deterministic init matching PyTorch nn.Linear default:
    U(-1/sqrt(fan_in), 1/sqrt(fan_in)) for both weight and bias."""
    weights, biases = [], []
    for (fan_in, fan_out) in LAYER_DIMS:
        key, kw, kb = jax.random.split(key, 3)
        bound = 1.0 / jnp.sqrt(jnp.float32(fan_in))
        w = jax.random.uniform(kw, (fan_in, fan_out), jnp.float32, -bound, bound)
        b = jax.random.uniform(kb, (1, fan_out), jnp.float32, -bound, bound)
        weights.append(w)
        biases.append(b)
    return weights, biases


def reference_forward_f32(x, weights, biases):
    """Pure-JAX f32 reference (unfused) mirroring the PyTorch module."""
    h = x
    for i in range(NUM_LAYERS):
        h = h @ weights[i] + biases[i]
        if i in RELU_AFTER:
            h = jnp.maximum(h, 0.0)
    return jax.nn.sigmoid(h)


def reference_forward_bf16(x, ws, bs):
    """Same math as the kernel (bf16 MXU operands, f32 accumulate/elementwise)."""
    h = x
    for i in range(NUM_FUSED):
        h = jnp.dot(h.astype(jnp.bfloat16), ws[i],
                    preferred_element_type=jnp.float32) + bs[i]
        if i < NUM_FUSED - 1:
            h = jnp.maximum(h, 0.0)
    return 0.5 * (jnp.tanh(0.5 * h) + 1.0)


if __name__ == "__main__":
    key = jax.random.PRNGKey(0)
    key, kx = jax.random.split(key)

    weights, biases = init_params(key)
    ws, bs = prepare_params(weights, biases)      # one-time, outside the jitted path

    # --- small-batch test (B=2, single grid step) ---
    batch = 2
    x = jax.random.normal(kx, (batch, IN_DIM), jnp.float32)
    out = jax.block_until_ready(autoencoder_forward(x, ws, bs))
    assert out.shape == (batch, IN_DIM), out.shape

    ref_bf16 = reference_forward_bf16(x, ws, bs)
    assert jnp.allclose(out, ref_bf16, atol=2e-4, rtol=2e-4), (
        float(jnp.max(jnp.abs(out - ref_bf16))))
    ref_f32 = reference_forward_f32(x, weights, biases)
    # Loose bound vs the pure-f32 reference accounts only for bf16 weight/act
    # rounding in the matmuls (sigmoid output bounded by 1).
    assert jnp.allclose(out, ref_f32, atol=3e-2, rtol=3e-2), (
        float(jnp.max(jnp.abs(out - ref_f32))))

    # --- multi-grid-step + batch-padding test (B not a multiple of tile_b) ---
    key, kx2 = jax.random.split(key)
    batch2 = 300
    x2 = jax.random.normal(kx2, (batch2, IN_DIM), jnp.float32)
    out2 = jax.block_until_ready(autoencoder_forward(x2, ws, bs, tile_b=128))
    assert out2.shape == (batch2, IN_DIM), out2.shape
    ref2 = reference_forward_bf16(x2, ws, bs)
    assert jnp.allclose(out2, ref2, atol=2e-4, rtol=2e-4), (
        float(jnp.max(jnp.abs(out2 - ref2))))

    print("KERNEL_OK")
</pallas_src>

<mosaic_0001>
module attributes {stable_mosaic.version = 11 : i64} {
  func.func @autoencoder_kernel(%arg0: i32, %arg1: memref<8x784xf32, #tpu.memory_space<vmem>>, %arg2: memref<784x128xbf16, #tpu.memory_space<vmem>>, %arg3: memref<128x64xbf16, #tpu.memory_space<vmem>>, %arg4: memref<64x12xbf16, #tpu.memory_space<vmem>>, %arg5: memref<12x12xbf16, #tpu.memory_space<vmem>>, %arg6: memref<12x64xbf16, #tpu.memory_space<vmem>>, %arg7: memref<64x128xbf16, #tpu.memory_space<vmem>>, %arg8: memref<128x784xbf16, #tpu.memory_space<vmem>>, %arg9: memref<1x128xf32, #tpu.memory_space<vmem>>, %arg10: memref<1x64xf32, #tpu.memory_space<vmem>>, %arg11: memref<1x12xf32, #tpu.memory_space<vmem>>, %arg12: memref<1x12xf32, #tpu.memory_space<vmem>>, %arg13: memref<1x64xf32, #tpu.memory_space<vmem>>, %arg14: memref<1x128xf32, #tpu.memory_space<vmem>>, %arg15: memref<1x784xf32, #tpu.memory_space<vmem>>, %arg16: memref<8x784xf32, #tpu.memory_space<vmem>>) attributes {dimension_semantics = [#tpu.dimension_semantics<parallel>], iteration_bounds = array<i64: 1>, scalar_prefetch = 0 : i64, scratch_operands = 0 : i64, tpu.core_type = #tpu.core_type<tc>, window_params = [{transform_indices = @transform_0, window_bounds = array<i64: 8, 784>}, {pipeline_mode = #tpu.pipeline_mode<synchronous>, transform_indices = @transform_1, window_bounds = array<i64: 784, 128>}, {pipeline_mode = #tpu.pipeline_mode<synchronous>, transform_indices = @transform_2, window_bounds = array<i64: 128, 64>}, {pipeline_mode = #tpu.pipeline_mode<synchronous>, transform_indices = @transform_3, window_bounds = array<i64: 64, 12>}, {pipeline_mode = #tpu.pipeline_mode<synchronous>, transform_indices = @transform_4, window_bounds = array<i64: 12, 12>}, {pipeline_mode = #tpu.pipeline_mode<synchronous>, transform_indices = @transform_5, window_bounds = array<i64: 12, 64>}, {pipeline_mode = #tpu.pipeline_mode<synchronous>, transform_indices = @transform_6, window_bounds = array<i64: 64, 128>}, {pipeline_mode = #tpu.pipeline_mode<synchronous>, transform_indices = @transform_7, window_bounds = array<i64: 128, 784>}, {pipeline_mode = #tpu.pipeline_mode<synchronous>, transform_indices = @transform_8, window_bounds = array<i64: 1, 128>}, {pipeline_mode = #tpu.pipeline_mode<synchronous>, transform_indices = @transform_9, window_bounds = array<i64: 1, 64>}, {pipeline_mode = #tpu.pipeline_mode<synchronous>, transform_indices = @transform_10, window_bounds = array<i64: 1, 12>}, {pipeline_mode = #tpu.pipeline_mode<synchronous>, transform_indices = @transform_11, window_bounds = array<i64: 1, 12>}, {pipeline_mode = #tpu.pipeline_mode<synchronous>, transform_indices = @transform_12, window_bounds = array<i64: 1, 64>}, {pipeline_mode = #tpu.pipeline_mode<synchronous>, transform_indices = @transform_13, window_bounds = array<i64: 1, 128>}, {pipeline_mode = #tpu.pipeline_mode<synchronous>, transform_indices = @transform_14, window_bounds = array<i64: 1, 784>}, {transform_indices = @transform_15, window_bounds = array<i64: 8, 784>}]} {
    %c0 = arith.constant 0 : index
    %c0_0 = arith.constant 0 : index
    %0 = vector.load %arg1[%c0, %c0_0] : memref<8x784xf32, #tpu.memory_space<vmem>>, vector<8x784xf32>
    %1 = arith.truncf %0 : vector<8x784xf32> to vector<8x784xbf16>
    %c0_1 = arith.constant 0 : index
    %c0_2 = arith.constant 0 : index
    %2 = vector.load %arg2[%c0_1, %c0_2] : memref<784x128xbf16, #tpu.memory_space<vmem>>, vector<784x128xbf16>
    %cst = arith.constant dense<0.000000e+00> : vector<8x128xf32>
    %3 = tpu.matmul %1, %2, %cst {dimension_numbers = #tpu.dot_dimension_numbers<[1], [0], [0], [1], [0, 0, 1, 1], [], []>} : vector<8x784xbf16>, vector<784x128xbf16>, vector<8x128xf32> -> vector<8x128xf32>
    %c0_3 = arith.constant 0 : index
    %c0_4 = arith.constant 0 : index
    %4 = vector.load %arg9[%c0_3, %c0_4] : memref<1x128xf32, #tpu.memory_space<vmem>>, vector<1x128xf32>
    %5 = vector.broadcast %4 : vector<1x128xf32> to vector<8x128xf32>
    %6 = arith.addf %3, %5 : vector<8x128xf32>
    %cst_5 = arith.constant 0.000000e+00 : f32
    %7 = vector.broadcast %cst_5 : f32 to vector<8x128xf32>
    %8 = arith.maximumf %6, %7 : vector<8x128xf32>
    %9 = arith.truncf %8 : vector<8x128xf32> to vector<8x128xbf16>
    %c0_6 = arith.constant 0 : index
    %c0_7 = arith.constant 0 : index
    %10 = vector.load %arg3[%c0_6, %c0_7] : memref<128x64xbf16, #tpu.memory_space<vmem>>, vector<128x64xbf16>
    %cst_8 = arith.constant dense<0.000000e+00> : vector<8x64xf32>
    %11 = tpu.matmul %9, %10, %cst_8 {dimension_numbers = #tpu.dot_dimension_numbers<[1], [0], [0], [1], [0, 0, 1, 1], [], []>} : vector<8x128xbf16>, vector<128x64xbf16>, vector<8x64xf32> -> vector<8x64xf32>
    %c0_9 = arith.constant 0 : index
    %c0_10 = arith.constant 0 : index
    %12 = vector.load %arg10[%c0_9, %c0_10] : memref<1x64xf32, #tpu.memory_space<vmem>>, vector<1x64xf32>
    %13 = vector.broadcast %12 : vector<1x64xf32> to vector<8x64xf32>
    %14 = arith.addf %11, %13 : vector<8x64xf32>
    %cst_11 = arith.constant 0.000000e+00 : f32
    %15 = vector.broadcast %cst_11 : f32 to vector<8x64xf32>
    %16 = arith.maximumf %14, %15 : vector<8x64xf32>
    %17 = arith.truncf %16 : vector<8x64xf32> to vector<8x64xbf16>
    %c0_12 = arith.constant 0 : index
    %c0_13 = arith.constant 0 : index
    %18 = vector.load %arg4[%c0_12, %c0_13] : memref<64x12xbf16, #tpu.memory_space<vmem>>, vector<64x12xbf16>
    %cst_14 = arith.constant dense<0.000000e+00> : vector<8x12xf32>
    %19 = tpu.matmul %17, %18, %cst_14 {dimension_numbers = #tpu.dot_dimension_numbers<[1], [0], [0], [1], [0, 0, 1, 1], [], []>} : vector<8x64xbf16>, vector<64x12xbf16>, vector<8x12xf32> -> vector<8x12xf32>
    %c0_15 = arith.constant 0 : index
    %c0_16 = arith.constant 0 : index
    %20 = vector.load %arg11[%c0_15, %c0_16] : memref<1x12xf32, #tpu.memory_space<vmem>>, vector<1x12xf32>
    %21 = vector.broadcast %20 : vector<1x12xf32> to vector<8x12xf32>
    %22 = arith.addf %19, %21 : vector<8x12xf32>
    %cst_17 = arith.constant 0.000000e+00 : f32
    %23 = vector.broadcast %cst_17 : f32 to vector<8x12xf32>
    %24 = arith.maximumf %22, %23 : vector<8x12xf32>
    %25 = arith.truncf %24 : vector<8x12xf32> to vector<8x12xbf16>
    %c0_18 = arith.constant 0 : index
    %c0_19 = arith.constant 0 : index
    %26 = vector.load %arg5[%c0_18, %c0_19] : memref<12x12xbf16, #tpu.memory_space<vmem>>, vector<12x12xbf16>
    %cst_20 = arith.constant dense<0.000000e+00> : vector<8x12xf32>
    %27 = tpu.matmul %25, %26, %cst_20 {dimension_numbers = #tpu.dot_dimension_numbers<[1], [0], [0], [1], [0, 0, 1, 1], [], []>} : vector<8x12xbf16>, vector<12x12xbf16>, vector<8x12xf32> -> vector<8x12xf32>
    %c0_21 = arith.constant 0 : index
    %c0_22 = arith.constant 0 : index
    %28 = vector.load %arg12[%c0_21, %c0_22] : memref<1x12xf32, #tpu.memory_space<vmem>>, vector<1x12xf32>
    %29 = vector.broadcast %28 : vector<1x12xf32> to vector<8x12xf32>
    %30 = arith.addf %27, %29 : vector<8x12xf32>
    %cst_23 = arith.constant 0.000000e+00 : f32
    %31 = vector.broadcast %cst_23 : f32 to vector<8x12xf32>
    %32 = arith.maximumf %30, %31 : vector<8x12xf32>
    %33 = arith.truncf %32 : vector<8x12xf32> to vector<8x12xbf16>
    %c0_24 = arith.constant 0 : index
    %c0_25 = arith.constant 0 : index
    %34 = vector.load %arg6[%c0_24, %c0_25] : memref<12x64xbf16, #tpu.memory_space<vmem>>, vector<12x64xbf16>
    %cst_26 = arith.constant dense<0.000000e+00> : vector<8x64xf32>
    %35 = tpu.matmul %33, %34, %cst_26 {dimension_numbers = #tpu.dot_dimension_numbers<[1], [0], [0], [1], [0, 0, 1, 1], [], []>} : vector<8x12xbf16>, vector<12x64xbf16>, vector<8x64xf32> -> vector<8x64xf32>
    %c0_27 = arith.constant 0 : index
    %c0_28 = arith.constant 0 : index
    %36 = vector.load %arg13[%c0_27, %c0_28] : memref<1x64xf32, #tpu.memory_space<vmem>>, vector<1x64xf32>
    %37 = vector.broadcast %36 : vector<1x64xf32> to vector<8x64xf32>
    %38 = arith.addf %35, %37 : vector<8x64xf32>
    %cst_29 = arith.constant 0.000000e+00 : f32
    %39 = vector.broadcast %cst_29 : f32 to vector<8x64xf32>
    %40 = arith.maximumf %38, %39 : vector<8x64xf32>
    %41 = arith.truncf %40 : vector<8x64xf32> to vector<8x64xbf16>
    %c0_30 = arith.constant 0 : index
    %c0_31 = arith.constant 0 : index
    %42 = vector.load %arg7[%c0_30, %c0_31] : memref<64x128xbf16, #tpu.memory_space<vmem>>, vector<64x128xbf16>
    %cst_32 = arith.constant dense<0.000000e+00> : vector<8x128xf32>
    %43 = tpu.matmul %41, %42, %cst_32 {dimension_numbers = #tpu.dot_dimension_numbers<[1], [0], [0], [1], [0, 0, 1, 1], [], []>} : vector<8x64xbf16>, vector<64x128xbf16>, vector<8x128xf32> -> vector<8x128xf32>
    %c0_33 = arith.constant 0 : index
    %c0_34 = arith.constant 0 : index
    %44 = vector.load %arg14[%c0_33, %c0_34] : memref<1x128xf32, #tpu.memory_space<vmem>>, vector<1x128xf32>
    %45 = vector.broadcast %44 : vector<1x128xf32> to vector<8x128xf32>
    %46 = arith.addf %43, %45 : vector<8x128xf32>
    %cst_35 = arith.constant 0.000000e+00 : f32
    %47 = vector.broadcast %cst_35 : f32 to vector<8x128xf32>
    %48 = arith.maximumf %46, %47 : vector<8x128xf32>
    %49 = arith.truncf %48 : vector<8x128xf32> to vector<8x128xbf16>
    %c0_36 = arith.constant 0 : index
    %c0_37 = arith.constant 0 : index
    %50 = vector.load %arg8[%c0_36, %c0_37] : memref<128x784xbf16, #tpu.memory_space<vmem>>, vector<128x784xbf16>
    %cst_38 = arith.constant dense<0.000000e+00> : vector<8x784xf32>
    %51 = tpu.matmul %49, %50, %cst_38 {dimension_numbers = #tpu.dot_dimension_numbers<[1], [0], [0], [1], [0, 0, 1, 1], [], []>} : vector<8x128xbf16>, vector<128x784xbf16>, vector<8x784xf32> -> vector<8x784xf32>
    %c0_39 = arith.constant 0 : index
    %c0_40 = arith.constant 0 : index
    %52 = vector.load %arg15[%c0_39, %c0_40] : memref<1x784xf32, #tpu.memory_space<vmem>>, vector<1x784xf32>
    %53 = vector.broadcast %52 : vector<1x784xf32> to vector<8x784xf32>
    %54 = arith.addf %51, %53 : vector<8x784xf32>
    %cst_41 = arith.constant 5.000000e-01 : f32
    %55 = vector.broadcast %cst_41 : f32 to vector<8x784xf32>
    %56 = arith.mulf %55, %54 : vector<8x784xf32>
    %57 = math.tanh %56 : vector<8x784xf32>
    %cst_42 = arith.constant 1.000000e+00 : f32
    %58 = vector.broadcast %cst_42 : f32 to vector<8x784xf32>
    %59 = arith.addf %57, %58 : vector<8x784xf32>
    %cst_43 = arith.constant 5.000000e-01 : f32
    %60 = vector.broadcast %cst_43 : f32 to vector<8x784xf32>
    %61 = arith.mulf %60, %59 : vector<8x784xf32>
    %c0_44 = arith.constant 0 : index
    %c0_45 = arith.constant 0 : index
    %62 = vector.load %arg16[%c0_44, %c0_45] : memref<8x784xf32, #tpu.memory_space<vmem>>, vector<8x784xf32>
    tpu.vector_store %arg16[%c0_44, %c0_45], %61 {strides = array<i32>} : memref<8x784xf32, #tpu.memory_space<vmem>>, vector<8x784xf32>,
    return
  }
  func.func @transform_0(%arg0: i32) -> (i32, i32) {
    %c0_i32 = arith.constant 0 : i32
    %c0_i32_0 = arith.constant 0 : i32
    return %arg0, %c0_i32 : i32, i32
  }
  func.func @transform_1(%arg0: i32) -> (i32, i32) {
    %c0_i32 = arith.constant 0 : i32
    %c0_i32_0 = arith.constant 0 : i32
    %c0_i32_1 = arith.constant 0 : i32
    return %c0_i32, %c0_i32_0 : i32, i32
  }
  func.func @transform_2(%arg0: i32) -> (i32, i32) {
    %c0_i32 = arith.constant 0 : i32
    %c0_i32_0 = arith.constant 0 : i32
    %c0_i32_1 = arith.constant 0 : i32
    return %c0_i32, %c0_i32_0 : i32, i32
  }
  func.func @transform_3(%arg0: i32) -> (i32, i32) {
    %c0_i32 = arith.constant 0 : i32
    %c0_i32_0 = arith.constant 0 : i32
    %c0_i32_1 = arith.constant 0 : i32
    return %c0_i32, %c0_i32_0 : i32, i32
  }
  func.func @transform_4(%arg0: i32) -> (i32, i32) {
    %c0_i32 = arith.constant 0 : i32
    %c0_i32_0 = arith.constant 0 : i32
    %c0_i32_1 = arith.constant 0 : i32
    return %c0_i32, %c0_i32_0 : i32, i32
  }
  func.func @transform_5(%arg0: i32) -> (i32, i32) {
    %c0_i32 = arith.constant 0 : i32
    %c0_i32_0 = arith.constant 0 : i32
    %c0_i32_1 = arith.constant 0 : i32
    return %c0_i32, %c0_i32_0 : i32, i32
  }
  func.func @transform_6(%arg0: i32) -> (i32, i32) {
    %c0_i32 = arith.constant 0 : i32
    %c0_i32_0 = arith.constant 0 : i32
    %c0_i32_1 = arith.constant 0 : i32
    return %c0_i32, %c0_i32_0 : i32, i32
  }
  func.func @transform_7(%arg0: i32) -> (i32, i32) {
    %c0_i32 = arith.constant 0 : i32
    %c0_i32_0 = arith.constant 0 : i32
    %c0_i32_1 = arith.constant 0 : i32
    return %c0_i32, %c0_i32_0 : i32, i32
  }
  func.func @transform_8(%arg0: i32) -> (i32, i32) {
    %c0_i32 = arith.constant 0 : i32
    %c0_i32_0 = arith.constant 0 : i32
    %c0_i32_1 = arith.constant 0 : i32
    return %c0_i32, %c0_i32_0 : i32, i32
  }
  func.func @transform_9(%arg0: i32) -> (i32, i32) {
    %c0_i32 = arith.constant 0 : i32
    %c0_i32_0 = arith.constant 0 : i32
    %c0_i32_1 = arith.constant 0 : i32
    return %c0_i32, %c0_i32_0 : i32, i32
  }
  func.func @transform_10(%arg0: i32) -> (i32, i32) {
    %c0_i32 = arith.constant 0 : i32
    %c0_i32_0 = arith.constant 0 : i32
    %c0_i32_1 = arith.constant 0 : i32
    return %c0_i32, %c0_i32_0 : i32, i32
  }
  func.func @transform_11(%arg0: i32) -> (i32, i32) {
    %c0_i32 = arith.constant 0 : i32
    %c0_i32_0 = arith.constant 0 : i32
    %c0_i32_1 = arith.constant 0 : i32
    return %c0_i32, %c0_i32_0 : i32, i32
  }
  func.func @transform_12(%arg0: i32) -> (i32, i32) {
    %c0_i32 = arith.constant 0 : i32
    %c0_i32_0 = arith.constant 0 : i32
    %c0_i32_1 = arith.constant 0 : i32
    return %c0_i32, %c0_i32_0 : i32, i32
  }
  func.func @transform_13(%arg0: i32) -> (i32, i32) {
    %c0_i32 = arith.constant 0 : i32
    %c0_i32_0 = arith.constant 0 : i32
    %c0_i32_1 = arith.constant 0 : i32
    return %c0_i32, %c0_i32_0 : i32, i32
  }
  func.func @transform_14(%arg0: i32) -> (i32, i32) {
    %c0_i32 = arith.constant 0 : i32
    %c0_i32_0 = arith.constant 0 : i32
    %c0_i32_1 = arith.constant 0 : i32
    return %c0_i32, %c0_i32_0 : i32, i32
  }
  func.func @transform_15(%arg0: i32) -> (i32, i32) {
    %c0_i32 = arith.constant 0 : i32
    %c0_i32_0 = arith.constant 0 : i32
    return %arg0, %c0_i32 : i32, i32
  }
}

</mosaic_0001>

<bundles_post_ra>
// kernel: autoencoder_forward.1
= control target key start
LH: loop header
LB: loop body
LE: loop exit
PB: predicated region body
PF: predicated region fallthrough
CT: control target
= control target key end

     0   :  { %vm461_vm0 = vcmask 130048   ;;  %vm711_vm1 = vcmask 1045504   ;;  %vm677_vm2 = vcmask 523264   ;;  %vm707_vm3 = vcmask 97280   ;;  %s2648_s1 = inlined_call_operand.vmem [shape: bf16[784,128], index: 1, kind: input, shape index: {}]   ;;  %s2649_s8 = inlined_call_operand.vmem [shape: f32[1,128], index: 8, kind: input, shape index: {}]   ;;  %s2650_s0 = inlined_call_operand.vmem [shape: f32[8,784], index: 0, kind: input, shape index: {}]   ;;  %s2651_s9 = inlined_call_operand.vmem [shape: f32[1,64], index: 9, kind: input, shape index: {}]   ;;  %s2652_s2 = inlined_call_operand.vmem [shape: bf16[128,64], index: 2, kind: input, shape index: {}]   ;;  %s2653_s3 = inlined_call_operand.vmem [shape: bf16[64,12], index: 3, kind: input, shape index: {}]   ;;  %s2654_s10 = inlined_call_operand.vmem [shape: f32[1,12], index: 10, kind: input, shape index: {}]   ;;  %s2655_s4 = inlined_call_operand.vmem [shape: bf16[12,12], index: 4, kind: input, shape index: {}]   ;;  %s2656_s11 = inlined_call_operand.vmem [shape: f32[1,12], index: 11, kind: input, shape index: {}]   ;;  %s2657_s5 = inlined_call_operand.vmem [shape: bf16[12,64], index: 5, kind: input, shape index: {}]   ;;  %s2658_s12 = inlined_call_operand.vmem [shape: f32[1,64], index: 12, kind: input, shape index: {}]   ;;  %s2659_s6 = inlined_call_operand.vmem [shape: bf16[64,128], index: 6, kind: input, shape index: {}]   ;;  %s2660_s13 = inlined_call_operand.vmem [shape: f32[1,128], index: 13, kind: input, shape index: {}]   ;;  %s2661_s7 = inlined_call_operand.vmem [shape: bf16[128,784], index: 7, kind: input, shape index: {}]   ;;  %s2662_s14 = inlined_call_operand.vmem [shape: f32[1,784], index: 14, kind: input, shape index: {}]   ;;  %s2663_s15 = inlined_call_operand.vmem [shape: f32[8,784], index: 15, kind: output, shape index: {}]  }
   0x1   :  { %v1818_v0 = vld [vmem:[%s2648_s1 + $0x38] sm:$0xff]  ;;  %v1817_v3 = vld [vmem:[%s2648_s1 + $0x30] sm:$0xff]  ;;  %v1816_v8 = vld [vmem:[%s2648_s1 + $0x28] sm:$0xff] }
   0x2   :  { %v1826_v1 = vld [vmem:[%s2648_s1 + $0x78] sm:$0xff]  ;;  %465 = vmatpush.bf16.msra.mxu0 %v1818_v0  ;;  %v1825_v4 = vld [vmem:[%s2648_s1 + $0x70] sm:$0xff]  ;;  %v1824_v9 = vld [vmem:[%s2648_s1 + $0x68] sm:$0xff] }
   0x3   :  { %v1834_v2 = vld [vmem:[%s2648_s1 + $0xb8] sm:$0xff]  ;;  %478 = vmatpush.bf16.msra.mxu1 %v1826_v1  ;;  %v1833_v5 = vld [vmem:[%s2648_s1 + $0xb0] sm:$0xff]  ;;  %v1832_v10 = vld [vmem:[%s2648_s1 + $0xa8] sm:$0xff] }
   0x4   :  { %491 = vmatpush.bf16.msra.mxu2 %v1834_v2  ;;  %v1842_v6 = vld [vmem:[%s2648_s1 + $0xf8] sm:$0xff]  ;;  %v1841_v7 = vld [vmem:[%s2648_s1 + $0xf0] sm:$0xff]  ;;  %v1840_v11 = vld [vmem:[%s2648_s1 + $0xe8] sm:$0xff] }
   0x5   :  { %504 = vmatpush.bf16.msra.mxu3 %v1842_v6  ;;  %v1815_v12 = vld [vmem:[%s2648_s1 + $0x20] sm:$0xff]  ;;  %v1814_v16 = vld [vmem:[%s2648_s1 + $0x18] sm:$0xff]  ;;  %v1813_v20 = vld [vmem:[%s2648_s1 + $0x10] sm:$0xff] }
   0x6   :  { %466 = vmatpush.bf16.msra.mxu0 %v1817_v3  ;;  %v1823_v13 = vld [vmem:[%s2648_s1 + $0x60] sm:$0xff]  ;;  %v1822_v17 = vld [vmem:[%s2648_s1 + $0x58] sm:$0xff]  ;;  %v1821_v21 = vld [vmem:[%s2648_s1 + $0x50] sm:$0xff] }
   0x7   :  { %479 = vmatpush.bf16.msra.mxu1 %v1825_v4  ;;  %v1831_v14 = vld [vmem:[%s2648_s1 + $0xa0] sm:$0xff]  ;;  %v1830_v18 = vld [vmem:[%s2648_s1 + $0x98] sm:$0xff]  ;;  %v1829_v22 = vld [vmem:[%s2648_s1 + $0x90] sm:$0xff] }
   0x8   :  { %492 = vmatpush.bf16.msra.mxu2 %v1833_v5  ;;  %v1839_v15 = vld [vmem:[%s2648_s1 + $0xe0] sm:$0xff]  ;;  %v1838_v19 = vld [vmem:[%s2648_s1 + $0xd8] sm:$0xff]  ;;  %v1837_v23 = vld [vmem:[%s2648_s1 + $0xd0] sm:$0xff] }
   0x9   :  { %505 = vmatpush.bf16.msra.mxu3 %v1841_v7  ;;  %v1812_v24 = vld [vmem:[%s2648_s1 + $0x8] sm:$0xff]  ;;  %v1811_v27 = vld [vmem:[%s2648_s1] sm:$0xff]  ;;  %v1850_v32 = vld [vmem:[%s2648_s1 + $0x138] sm:$0xff] }
   0xa   :  { %467 = vmatpush.bf16.msra.mxu0 %v1816_v8  ;;  %v1820_v25 = vld [vmem:[%s2648_s1 + $0x48] sm:$0xff]  ;;  %v1819_v29 = vld [vmem:[%s2648_s1 + $0x40] sm:$0xff]  ;;  %v1858_v33 = vld [vmem:[%s2648_s1 + $0x178] sm:$0xff] }
   0xb   :  { %480 = vmatpush.bf16.msra.mxu1 %v1824_v9  ;;  %v1828_v26 = vld [vmem:[%s2648_s1 + $0x88] sm:$0xff]  ;;  %v51_v30 = vld [vmem:[%s2650_s0] sm:$0xff]  ;;  %v53_v35 = vld [vmem:[%s2650_s0 + $0x10] sm:$0xff] }
   0xc   :  { %493 = vmatpush.bf16.msra.mxu2 %v1832_v10  ;;  %v1836_v28 = vld [vmem:[%s2648_s1 + $0xc8] sm:$0xff]  ;;  %v1827_v34 = vld [vmem:[%s2648_s1 + $0x80] sm:$0xff]  ;;  %v58_v36 = vpack.c.bf16 %v51_v30, %v51_v30  ;;  %v54_v40 = vld [vmem:[%s2650_s0 + $0x18] sm:$0xff]  ;;  %v60_v43 = vpack.c.bf16 %v53_v35, %v53_v35 }
   0xd   :  { %506 = vmatpush.bf16.msra.mxu3 %v1840_v11  ;;  %v52_v31 = vld [vmem:[%s2650_s0 + $0x8] sm:$0xff]  ;;  %v1835_v38 = vld [vmem:[%s2648_s1 + $0xc0] sm:$0xff]  ;;  %v1849_v41 = vld [vmem:[%s2648_s1 + $0x130] sm:$0xff]  ;;  %v61_v44 = vpack.c.bf16 %v54_v40, %v54_v40 }
   0xe   :  { %468 = vmatpush.bf16.msra.mxu0 %v1815_v12  ;;  %v59_v37 = vpack.c.bf16 %v52_v31, %v52_v31  ;;  %v1859_v39 = vld [vmem:[%s2648_s1 + $0x180] sm:$0xff]  ;;  %v1857_v42 = vld [vmem:[%s2648_s1 + $0x170] sm:$0xff]  ;;  %v1848_v45 = vld [vmem:[%s2648_s1 + $0x128] sm:$0xff] }
   0xf   :  { %481 = vmatpush.bf16.msra.mxu1 %v1823_v13  ;;  %v1856_v46 = vld [vmem:[%s2648_s1 + $0x168] sm:$0xff]  ;;  %v1847_v47 = vld [vmem:[%s2648_s1 + $0x120] sm:$0xff]  ;;  %v1846_v49 = vld [vmem:[%s2648_s1 + $0x118] sm:$0xff] }
  0x10   :  { %494 = vmatpush.bf16.msra.mxu2 %v1831_v14  ;;  %v1855_v48 = vld [vmem:[%s2648_s1 + $0x160] sm:$0xff]  ;;  %v1854_v50 = vld [vmem:[%s2648_s1 + $0x158] sm:$0xff]  ;;  %v57_v51 = vld [vmem:[%s2650_s0 + $0x30] sm:$0xff] }
  0x11   :  { %507 = vmatpush.bf16.msra.mxu3 %v1839_v15  ;;  %v1845_v52 = vld [vmem:[%s2648_s1 + $0x110] sm:$0xff]  ;;  %v64_v54 = vpack.c.bf16 %v57_v51, %v57_v51  ;;  %v1844_v55 = vld [vmem:[%s2648_s1 + $0x108] sm:$0xff]  ;;  %v1843_v57 = vld [vmem:[%s2648_s1 + $0x100] sm:$0xff] }
  0x12   :  { %469 = vmatpush.bf16.msra.mxu0 %v1814_v16  ;;  %v1853_v53 = vld [vmem:[%s2648_s1 + $0x150] sm:$0xff]  ;;  %v1852_v56 = vld [vmem:[%s2648_s1 + $0x148] sm:$0xff]  ;;  %v1851_v58 = vld [vmem:[%s2648_s1 + $0x140] sm:$0xff] }
  0x13   :  { %482 = vmatpush.bf16.msra.mxu1 %v1822_v17  ;;  %v55_v59 = vld [vmem:[%s2650_s0 + $0x20] sm:$0xff]  ;;  %v56_v60 = vld [vmem:[%s2650_s0 + $0x28] sm:$0xff]  ;;  %v1867_v63 = vld [vmem:[%s2652_s2 + $0x38] sm:$0xff] }
  0x14   :  { %495 = vmatpush.bf16.msra.mxu2 %v1830_v18  ;;  %v62_v61 = vpack.c.bf16 %v55_v59, %v55_v59  ;;  %v63_v62 = vpack.c.bf16 %v56_v60, %v56_v60  ;;  %v1866_v0 = vld [vmem:[%s2652_s2 + $0x30] sm:$0xff]  ;;  %v1865_v1 = vld [vmem:[%s2652_s2 + $0x28] sm:$0xff]  ;;  %v1864_v2 = vld [vmem:[%s2652_s2 + $0x20] sm:$0xff] }
  0x15   :  { %508 = vmatpush.bf16.msra.mxu3 %v1838_v19  ;;  %v1863_v3 = vld [vmem:[%s2652_s2 + $0x18] sm:$0xff]  ;;  %v1862_v4 = vld [vmem:[%s2652_s2 + $0x10] sm:$0xff]  ;;  %v1861_v5 = vld [vmem:[%s2652_s2 + $0x8] sm:$0xff] }
  0x16   :  { %470 = vmatpush.bf16.msra.mxu0 %v1813_v20  ;;  %v1860_v8 = vld [vmem:[%s2652_s2] sm:$0xff]  ;;  %v1871_v11 = vld [vmem:[%s2653_s3 + $0x18] sm:$0xff]  ;;  %v1870_v14 = vld [vmem:[%s2653_s3 + $0x10] sm:$0xff] }
  0x17   :  { %483 = vmatpush.bf16.msra.mxu1 %v1821_v21  ;;  %v1934_v15 = vld [vmem:[%s2649_s8] ss:$0 sm:$0xff]  ;;  %v1869_v16 = vld [vmem:[%s2653_s3 + $0x8] sm:$0xff] }
  0x18   :  { %496 = vmatpush.bf16.msra.mxu2 %v1829_v22  ;;  %v1562_v35 = vld [vmem:[%s2655_s4] sm:$0xf] }
  0x19   :  { %509 = vmatpush.bf16.msra.mxu3 %v1837_v23 }
  0x1a   :  { %471 = vmatpush.bf16.msra.mxu0 %v1812_v24 }
  0x1b   :  { %484 = vmatpush.bf16.msra.mxu1 %v1820_v25 }
  0x1c   :  { %497 = vmatpush.bf16.msra.mxu2 %v1828_v26 }
  0x1d   :  { %510 = vmatpush.bf16.msra.mxu3 %v1836_v28 }
  0x1e   :  { %472 = vmatpush.bf16.msra.mxu0 %v1811_v27 }
  0x1f   :  { %485 = vmatpush.bf16.msra.mxu1 %v1819_v29 }
  0x20   :  { %498 = vmatpush.bf16.msra.mxu2 %v1827_v34  ;;  %v1868_v34 = vld [vmem:[%s2653_s3] sm:$0xff] }
  0x21   :  { %473 = vmatmul.bf16.vlgmr.msra.gmra.mxu0 %v58_v36  ;;  %511 = vmatpush.bf16.msra.mxu3 %v1835_v38  ;;  %v1872_v36 = vld [vmem:[%s2655_s4] sm:$0x30] }
  0x22   :  { %517 = vmatpush.bf16.msrb.mxu0 %v1850_v32  ;;  %486 = vmatmul.bf16.vlgmr.msra.gmra.mxu1 %v59_v37  ;;  %v1563_v37 = vor.u32 %v1872_v36, %v1562_v35  ;;  %v1910_v35 = vld [vmem:[%s2661_s7 + $0x100] sm:$0xf0] }
  0x23   :  { %530 = vmatpush.bf16.msrb.mxu1 %v1858_v33  ;;  %499 = vmatmul.bf16.vlgmr.msra.gmra.mxu2 %v60_v43 }
  0x24   :  { %550 = vmatpush.bf16.msrb.mxu2 %v1859_v39  ;;  %512 = vmatmul.bf16.vlgmr.msra.gmra.mxu3 %v61_v44  ;;  %v713_v38 = vsel %vm711_vm1, %v1563_v37, 0  ;;  %v1935_v39 = vld [vmem:[%s2651_s9] ss:$0 sm:$0xff]  ;;  %v1921_v37 = vld [vmem:[%s2661_s7 + $0x15c] sm:$0xf] }
  0x25   :  { %626 = vmatpush.bf16.msrb.mxu3 %v1867_v63 }
  0x26   :  { %518 = vmatpush.bf16.msrb.mxu0 %v1849_v41 }
  0x27   :  { %531 = vmatpush.bf16.msrb.mxu1 %v1857_v42 }
  0x28   :  { %685 = vmatpush.bf16.msra.mxu2 %v1871_v11  ;;  %v1923_v11 = vld [vmem:[%s2661_s7 + $0x168] sm:$0xf0] }
  0x29   :  { %627 = vmatpush.bf16.msrb.mxu3 %v1866_v0  ;;  %v1874_v0 = vld [vmem:[%s2659_s6] sm:$0xff] }
  0x2a   :  { %519 = vmatpush.bf16.msrb.mxu0 %v1848_v45  ;;  %v1567_v45 = vld [vmem:[%s2657_s5] sm:$0xf] }
  0x2b   :  { %532 = vmatpush.bf16.msrb.mxu1 %v1856_v46  ;;  %v1873_v46 = vld [vmem:[%s2657_s5] sm:$0x30] }
  0x2c   :  { %686 = vmatpush.bf16.msra.mxu2 %v1870_v14  ;;  %v1759_v14 = vld [vmem:[%s2661_s7 + $0x16c] sm:$0xf0] }
  0x2d   :  { %628 = vmatpush.bf16.msrb.mxu3 %v1865_v1  ;;  %v1785_v1 = vld [vmem:[%s2661_s7 + $0x188] sm:$0xf] }
  0x2e   :  { %520 = vmatpush.bf16.msrb.mxu0 %v1847_v47  ;;  %v1568_v47 = vor.u32 %v1873_v46, %v1567_v45  ;;  %v1675_v45 = vld [vmem:[%s2661_s7 + $0xc4] sm:$0xf0]  ;;  %v1681_v46 = vld [vmem:[%s2661_s7 + $0xb0] sm:$0xf] }
  0x2f   :  { %533 = vmatpush.bf16.msrb.mxu1 %v1855_v48 }
  0x30   :  { %687 = vmatpush.bf16.msra.mxu2 %v1869_v16  ;;  %v745_v48 = vsel %vm711_vm1, %v1568_v47, 0  ;;  %v1924_v16 = vld [vmem:[%s2661_s7 + $0x170] sm:$0xf0] }
  0x31   :  { %629 = vmatpush.bf16.msrb.mxu3 %v1864_v2  ;;  %v1930_v2 = vld [vmem:[%s2661_s7 + $0x1a0] sm:$0xf0] }
  0x32   :  { %521 = vmatpush.bf16.msrb.mxu0 %v1846_v49  ;;  %v1936_v49 = vld [vmem:[%s2654_s10] ss:$0 sm:$0xff] }
  0x33   :  { %534 = vmatpush.bf16.msrb.mxu1 %v1854_v50  ;;  %1510 = vmatmul.msk.bf16.vlgmr.msrb.gmra.mxu2 %vm461_vm0, %v64_v54 }
  0x34   :  { %688 = vmatpush.bf16.msra.mxu2 %v1868_v34  ;;  %v1709_v34 = vld [vmem:[%s2661_s7 + $0xe8] sm:$0xf] }
  0x35   :  { %630 = vmatpush.bf16.msrb.mxu3 %v1863_v3  ;;  %v1927_v3 = vld [vmem:[%s2661_s7 + $0x18c] sm:$0xf] }
  0x36   :  { %522 = vmatpush.bf16.msrb.mxu0 %v1845_v52 }
  0x37   :  { %535 = vmatpush.bf16.msrb.mxu1 %v1853_v53 }
  0x38   :  { %722 = vmatpush.bf16.msrb.mxu2 %v713_v38 }
  0x39   :  { %631 = vmatpush.bf16.msrb.mxu3 %v1862_v4  ;;  %v1786_v4 = vor.u32 %v1930_v2, %v1785_v1  ;;  %v1617_v1 = vld [vmem:[%s2661_s7 + $0x38] sm:$0xf]  ;;  %v1888_v2 = vld [vmem:[%s2661_s7 + $0x50] sm:$0xf0] }
  0x3a   :  { %523 = vmatpush.bf16.msrb.mxu0 %v1844_v55  ;;  %v1877_v55 = vld [vmem:[%s2659_s6 + $0x18] sm:$0xff] }
  0x3b   :  { %536 = vmatpush.bf16.msrb.mxu1 %v1852_v56  ;;  %v1876_v56 = vld [vmem:[%s2659_s6 + $0x10] sm:$0xff] }
  0x3d   :  { %632 = vmatpush.bf16.msrb.mxu3 %v1861_v5  ;;  %v1787_v5 = vld [vmem:[%s2661_s7 + $0x1a4] sm:$0xf0] }
  0x3e   :  { %524 = vmatpush.bf16.msrb.mxu0 %v1843_v57  ;;  %v1875_v57 = vld [vmem:[%s2659_s6 + $0x8] sm:$0xff] }
  0x3f   :  { %537 = vmatpush.bf16.msrb.mxu1 %v1851_v58  ;;  %v1937_v58 = vld [vmem:[%s2656_s11] ss:$0 sm:$0xff] }
  0x41   :  { %525 = vmatmul.bf16.vlgmr.msrb.gmra.mxu0 %v62_v61  ;;  %633 = vmatpush.bf16.msrb.mxu3 %v1860_v8  ;;  %v1790_v8 = vor.u32 %v1927_v3, %v1787_v5 }
  0x42   :  { %538 = vmatmul.bf16.vlgmr.msrb.gmra.mxu1 %v63_v62 }
  0x43   :  { %754 = vmatpush.bf16.msra.mxu1 %v745_v48  ;;  %1197 = vmatpush.bf16.msra.mxu0 %v1790_v8  ;;  %v1903_v48 = vld [vmem:[%s2661_s7 + $0xc8] sm:$0xf0]  ;;  %v1683_v8 = vld [vmem:[%s2661_s7 + $0xcc] sm:$0xf0] }
  0x45   :  { %1184 = vmatpush.bf16.msra.mxu3 %v1786_v4 }
  0x9e   :  { %v474_v6 = vpop.f32.mrf.mxu0 }
  0x9f   :  { %v487_v7 = vpop.f32.mrf.mxu1  ;;  %v475_v17 = vadd.f32 %v1934_v15, %v474_v6  ;;  %v1793_v6 = vld [vmem:[%s2661_s7 + $0x190] sm:$0xf]  ;;  %v1765_v15 = vld [vmem:[%s2661_s7 + $0x158] sm:$0xf] }
  0xa1   :  { %v488_v20 = vadd.f32 %v487_v7, %v475_v17  ;;  %v1931_v7 = vld [vmem:[%s2661_s7 + $0x1a8] sm:$0xf0] }
  0xa6   :  { %v476_v9 = vpop.f32.mrf.mxu0  ;;  %v500_v12 = vpop.f32.mrf.mxu2 }
  0xa7   :  { %v489_v10 = vpop.f32.mrf.mxu1  ;;  %v513_v13 = vpop.f32.mrf.mxu3  ;;  %v501_v21 = vadd.f32 %v500_v12, %v488_v20  ;;  %v1794_v9 = vor.u32 %v1931_v7, %v1793_v6  ;;  %v1920_v12 = vld [vmem:[%s2661_s7 + $0x154] sm:$0xf]  ;;  %v1885_v6 = vld [vmem:[%s2661_s7 + $0x3c] sm:$0xf] }
  0xa8   :  { %v1757_v10 = vld [vmem:[%s2661_s7 + $0x150] sm:$0xf]  ;;  %v1762_v17 = vor.u32 %v1920_v12, %v1759_v14  ;;  %v1916_v20 = vld [vmem:[%s2661_s7 + $0x130] sm:$0xf0]  ;;  %v1618_v12 = vor.u32 %v1888_v2, %v1617_v1  ;;  %v1881_v14 = vld [vmem:[%s2661_s7 + $0x18] sm:$0xf0] }
  0xa9   :  { %v514_v23 = vadd.f32 %v513_v13, %v501_v21  ;;  %v1758_v13 = vor.u32 %v1923_v11, %v1757_v10  ;;  %1210 = vmatpush.bf16.msrb.mxu1 %v1794_v9  ;;  %v1913_v21 = vld [vmem:[%s2661_s7 + $0x11c] sm:$0xf]  ;;  %v1900_v7 = vld [vmem:[%s2661_s7 + $0xb4] sm:$0xf]  ;;  %v1619_v9 = vld [vmem:[%s2661_s7 + $0x54] sm:$0xf0] }
  0xaa   :  { %1198 = vmatpush.bf16.msra.mxu0 %v1762_v17  ;;  %v1625_v10 = vld [vmem:[%s2661_s7 + $0x40] sm:$0xf]  ;;  %v1889_v11 = vld [vmem:[%s2661_s7 + $0x58] sm:$0xf0]  ;;  %v1717_v1 = vld [vmem:[%s2661_s7 + $0xf0] sm:$0xf] }
  0xab   :  { %1185 = vmatpush.bf16.msra.mxu3 %v1758_v13  ;;  %v1589_v13 = vld [vmem:[%s2661_s7] sm:$0xf] }
  0xae   :  { %v502_v18 = vpop.f32.mrf.mxu2 }
  0xaf   :  { %v515_v19 = vpop.f32.mrf.mxu3  ;;  %v1766_v18 = vor.u32 %v1924_v16, %v1765_v15  ;;  %v1878_v15 = vld [vmem:[%s2661_s7 + $0x4] sm:$0xf]  ;;  %v1686_v16 = vor.u32 %v1900_v7, %v1683_v8  ;;  %v1725_v8 = vld [vmem:[%s2661_s7 + $0xf8] sm:$0xf] }
  0xb0   :  { %v1729_v19 = vld [vmem:[%s2661_s7 + $0x118] sm:$0xf] }
  0xb1   :  { %1211 = vmatpush.bf16.msrb.mxu1 %v1766_v18  ;;  %v1622_v18 = vor.u32 %v1885_v6, %v1619_v9  ;;  %v1912_v9 = vld [vmem:[%s2661_s7 + $0x110] sm:$0xf0] }
  0xb6   :  { %v552_v22 = vpop.f32.mrf.mxu2 }
  0xbe   :  { %v526_v24 = vpop.f32.mrf.mxu0  ;;  %v554_v28 = vpop.f32.mrf.mxu2 }
  0xbf   :  { %v539_v25 = vpop.f32.mrf.mxu1  ;;  %v527_v26 = vadd.f32 %v526_v24, %v514_v23  ;;  %v1737_v23 = vld [vmem:[%s2661_s7 + $0x120] sm:$0xf]  ;;  %v1917_v24 = vld [vmem:[%s2661_s7 + $0x138] sm:$0xf0] }
  0xc1   :  { %v540_v27 = vadd.f32 %v539_v25, %v527_v26  ;;  %v1730_v25 = vor.u32 %v1916_v20, %v1729_v19  ;;  %v1701_v26 = vld [vmem:[%s2661_s7 + $0xe0] sm:$0xf]  ;;  %v1626_v19 = vor.u32 %v1889_v11, %v1625_v10  ;;  %v1726_v10 = vor.u32 %v1912_v9, %v1725_v8  ;;  %v1689_v11 = vld [vmem:[%s2661_s7 + $0xb8] sm:$0xf] }
  0xc2   :  { %v1591_v20 = vld [vmem:[%s2661_s7 + $0x1c] sm:$0xf0] }
  0xc3   :  { %v553_v29 = vadd.f32 %v552_v22, %v540_v27  ;;  %v1731_v22 = vld [vmem:[%s2661_s7 + $0x134] sm:$0xf0]  ;;  %v1909_v27 = vld [vmem:[%s2661_s7 + $0xf8] sm:$0xf0]  ;;  %1186 = vmatpush.bf16.msra.mxu3 %v1730_v25  ;;  %v1932_v25 = vld [vmem:[%s2661_s7 + $0x1b0] sm:$0xf0] }
  0xc4   :  { %v1734_v28 = vor.u32 %v1913_v21, %v1731_v22  ;;  %v1702_v38 = vor.u32 %v1909_v27, %v1701_v26  ;;  %v1597_v21 = vld [vmem:[%s2661_s7 + $0x8] sm:$0xf]  ;;  %v1882_v22 = vld [vmem:[%s2661_s7 + $0x20] sm:$0xf0]  ;;  %v1929_v26 = vld [vmem:[%s2661_s7 + $0x19c] sm:$0xf] }
  0xc5   :  { %v556_v30 = vmax.f32 %v553_v29, 0.0  ;;  %v1738_v29 = vor.u32 %v1917_v24, %v1737_v23  ;;  %v1801_v24 = vld [vmem:[%s2661_s7 + $0x198] sm:$0xf] }
  0xc6   :  { %v528_v31 = vpop.f32.mrf.mxu0  ;;  %1199 = vmatpush.bf16.msra.mxu0 %v1734_v28  ;;  %v1803_v27 = vld [vmem:[%s2661_s7 + $0x1b4] sm:$0xf0]  ;;  %v1809_v28 = vld [vmem:[%s2661_s7 + $0x1a0] sm:$0xf] }
  0xc7   :  { %v541_v32 = vpop.f32.mrf.mxu1  ;;  %v557_v33 = vpack.c.bf16 %v556_v30, %v556_v30  ;;  %v1906_v30 = vld [vmem:[%s2661_s7 + $0xe4] sm:$0xf]  ;;  %v1928_v31 = vld [vmem:[%s2661_s7 + $0x194] sm:$0xf]  ;;  %1212 = vmatpush.bf16.msrb.mxu1 %v1738_v29  ;;  %1187 = vmatpush.bf16.msra.mxu3 %v1702_v38  ;;  %v1933_v29 = vld [vmem:[%s2661_s7 + $0x1b8] sm:$0xf0]  ;;  %v1806_v38 = vor.u32 %v1929_v26, %v1803_v27 }
  0xc8   :  { %v1795_v32 = vld [vmem:[%s2661_s7 + $0x1ac] sm:$0xf0]  ;;  %v1898_v26 = vld [vmem:[%s2661_s7 + $0xa0] sm:$0xf0] }
  0xc9   :  { %634 = vmatmul.bf16.vlgmr.msrb.gmra.mxu3 %v557_v33  ;;  %v1703_v33 = vld [vmem:[%s2661_s7 + $0xfc] sm:$0xf0]  ;;  %v1798_v36 = vor.u32 %v1928_v31, %v1795_v32  ;;  %v1590_v31 = vor.u32 %v1881_v14, %v1589_v13  ;;  %v1893_v32 = vld [vmem:[%s2661_s7 + $0x7c] sm:$0xf] }
  0xca   :  { %v1901_v13 = vld [vmem:[%s2661_s7 + $0xbc] sm:$0xf] }
 0x14c   :  { %v635_v40 = vpop.f32.mrf.mxu3 }
 0x14d   :  { %v636_v41 = vadd.f32 %v1935_v39, %v635_v40  ;;  %v1673_v39 = vld [vmem:[%s2661_s7 + $0xa8] sm:$0xf]  ;;  %v1902_v40 = vld [vmem:[%s2661_s7 + $0xc0] sm:$0xf0] }
 0x14f   :  { %v639_v42 = vmax.f32 %v636_v41, 0.0  ;;  %v1767_v41 = vld [vmem:[%s2661_s7 + $0x174] sm:$0xf0] }
 0x150   :  { %v1770_v47 = vor.u32 %v1921_v37, %v1767_v41  ;;  %v1802_v37 = vor.u32 %v1932_v25, %v1801_v24  ;;  %v1663_v24 = vld [vmem:[%s2661_s7 + $0x9c] sm:$0xf0]  ;;  %v1669_v25 = vld [vmem:[%s2661_s7 + $0x88] sm:$0xf] }
 0x151   :  { %v640_v43 = vpack.c.bf16 %v639_v42, %v639_v42  ;;  %v1706_v42 = vor.u32 %v1906_v30, %v1703_v33  ;;  %v1655_v33 = vld [vmem:[%s2661_s7 + $0x94] sm:$0xf0] }
 0x152   :  { %v1658_v41 = vor.u32 %v1893_v32, %v1655_v33  ;;  %v1635_v32 = vld [vmem:[%s2661_s7 + $0x64] sm:$0xf0]  ;;  %v1641_v33 = vld [vmem:[%s2661_s7 + $0x50] sm:$0xf] }
 0x153   :  { %1559 = vmatmul.msk.bf16.vlgmr.msra.gmra.mxu2 %vm677_vm2, %v640_v43  ;;  %v1710_v43 = vor.u32 %v1910_v35, %v1709_v34  ;;  %1200 = vmatpush.bf16.msra.mxu0 %v1706_v42  ;;  %v1594_v34 = vor.u32 %v1878_v15, %v1591_v20  ;;  %v1598_v35 = vor.u32 %v1882_v22, %v1597_v21  ;;  %v1925_v42 = vld [vmem:[%s2661_s7 + $0x178] sm:$0xf0]  ;;  %v1691_v15 = vld [vmem:[%s2661_s7 + $0xd4] sm:$0xf0]  ;;  %v1661_v20 = vld [vmem:[%s2661_s7 + $0x80] sm:$0xf] }
 0x154   :  { %v637_v44 = vpop.f32.mrf.mxu3  ;;  %805 = vmatpush.bf16.msra.mxu2 %v1877_v55  ;;  %v1897_v21 = vld [vmem:[%s2661_s7 + $0x98] sm:$0xf0]  ;;  %v1894_v22 = vld [vmem:[%s2661_s7 + $0x84] sm:$0xf] }
 0x155   :  { %v1899_v44 = vld [vmem:[%s2661_s7 + $0xac] sm:$0xf]  ;;  %1213 = vmatpush.bf16.msrb.mxu1 %v1710_v43  ;;  %v1922_v43 = vld [vmem:[%s2661_s7 + $0x164] sm:$0xf]  ;;  %v1666_v27 = vor.u32 %v1894_v22, %v1663_v24 }
 0x156   :  { %v1678_v55 = vor.u32 %v1899_v44, %v1675_v45  ;;  %v1775_v44 = vld [vmem:[%s2661_s7 + $0x17c] sm:$0xf0]  ;;  %v1781_v45 = vld [vmem:[%s2661_s7 + $0x168] sm:$0xf] }
 0x158   :  { %806 = vmatpush.bf16.msra.mxu2 %v1876_v56  ;;  %v1682_v56 = vor.u32 %v1903_v48, %v1681_v46  ;;  %1201 = vmatpush.bf16.msra.mxu0 %v1678_v55  ;;  %v1926_v46 = vld [vmem:[%s2661_s7 + $0x180] sm:$0xf0] }
 0x159   :  { %v1918_v55 = vld [vmem:[%s2661_s7 + $0x140] sm:$0xf0] }
 0x15a   :  { %1214 = vmatpush.bf16.msrb.mxu1 %v1682_v56  ;;  %v1915_v56 = vld [vmem:[%s2661_s7 + $0x12c] sm:$0xf] }
 0x15c   :  { %807 = vmatpush.bf16.msra.mxu2 %v1875_v57  ;;  %v1892_v57 = vld [vmem:[%s2661_s7 + $0x74] sm:$0xf] }
 0x160   :  { %808 = vmatpush.bf16.msra.mxu2 %v1874_v0 }
 0x1d6   :  { %v690_v50 = vpop.f32.mrf.mxu2 }
 0x1d7   :  { %v691_v51 = vadd.f32 %v1936_v49, %v690_v50  ;;  %v1914_v49 = vld [vmem:[%s2661_s7 + $0x124] sm:$0xf]  ;;  %v1739_v50 = vld [vmem:[%s2661_s7 + $0x13c] sm:$0xf0] }
 0x1d9   :  { %v694_v52 = vmax.f32 %v691_v51, 0.0  ;;  %v1674_v51 = vor.u32 %v1902_v40, %v1673_v39  ;;  %v1773_v39 = vld [vmem:[%s2661_s7 + $0x160] sm:$0xf]  ;;  %v1810_v40 = vor.u32 %v1933_v29, %v1809_v28  ;;  %v1670_v28 = vor.u32 %v1898_v26, %v1669_v25  ;;  %v1633_v29 = vld [vmem:[%s2661_s7 + $0x48] sm:$0xf] }
 0x1da   :  { %v1774_v48 = vor.u32 %v1925_v42, %v1773_v39  ;;  %v1883_v39 = vld [vmem:[%s2661_s7 + $0x28] sm:$0xf0]  ;;  %v1613_v42 = vld [vmem:[%s2661_s7 + $0x18] sm:$0xf] }
 0x1db   :  { %v695_v53 = vpack.c.bf16 %v694_v52, %v694_v52  ;;  %v1645_v52 = vld [vmem:[%s2661_s7 + $0x70] sm:$0xf]  ;;  %1188 = vmatpush.bf16.msra.mxu3 %v1674_v51  ;;  %v1886_v51 = vld [vmem:[%s2661_s7 + $0x44] sm:$0xf] }
 0x1dd   :  { %1564 = vmatmul.msk.bf16.vlgmr.msrb.gmra.mxu2 %vm707_vm3, %v695_v53  ;;  %v1895_v53 = vld [vmem:[%s2661_s7 + $0x88] sm:$0xf0] }
 0x1de   :  { %v692_v54 = vpop.f32.mrf.mxu2  ;;  %1223 = vmatpush.bf16.msrb.mxu2 %v1798_v36  ;;  %v1646_v0 = vor.u32 %v1895_v53, %v1645_v52  ;;  %v1627_v52 = vld [vmem:[%s2661_s7 + $0x5c] sm:$0xf0]  ;;  %v1745_v53 = vld [vmem:[%s2661_s7 + $0x128] sm:$0xf] }
 0x1df   :  { %v1742_v54 = vor.u32 %v1914_v49, %v1739_v50  ;;  %v1778_v49 = vor.u32 %v1922_v43, %v1775_v44  ;;  %v1782_v50 = vor.u32 %v1926_v46, %v1781_v45  ;;  %v1884_v43 = vld [vmem:[%s2661_s7 + $0x30] sm:$0xf0] }
 0x1e0   :  { %1189 = vmatpush.bf16.msra.mxu3 %v1646_v0  ;;  %v1599_v0 = vld [vmem:[%s2661_s7 + $0x24] sm:$0xf0]  ;;  %v1614_v46 = vor.u32 %v1884_v43, %v1613_v42 }
 0x1e2   :  { %1224 = vmatpush.bf16.msrb.mxu2 %v1770_v47 }
 0x1e4   :  { %1190 = vmatpush.bf16.msra.mxu3 %v1618_v12  ;;  %v1904_v12 = vld [vmem:[%s2661_s7 + $0xd0] sm:$0xf0] }
 0x1e5   :  { %v1690_v14 = vor.u32 %v1904_v12, %v1689_v11 }
 0x1e6   :  { %1225 = vmatpush.bf16.msrb.mxu2 %v1742_v54  ;;  %v1630_v54 = vor.u32 %v1886_v51, %v1627_v52 }
 0x1e8   :  { %1191 = vmatpush.bf16.msra.mxu3 %v1590_v31  ;;  %v1887_v31 = vld [vmem:[%s2661_s7 + $0x4c] sm:$0xf] }
 0x1ec   :  { %1236 = vmatpush.bf16.msrb.mxu3 %v1802_v37 }
 0x1f0   :  { %1237 = vmatpush.bf16.msrb.mxu3 %v1774_v48 }
 0x260   :  { %v724_v59 = vpop.f32.mrf.mxu2 }
 0x261   :  { %v725_v60 = vadd.f32 %v1937_v58, %v724_v59  ;;  %v1907_v58 = vld [vmem:[%s2661_s7 + $0xec] sm:$0xf]  ;;  %v1711_v59 = vld [vmem:[%s2661_s7 + $0x104] sm:$0xf0] }
 0x262   :  { %v1714_v3 = vor.u32 %v1907_v58, %v1711_v59  ;;  %v1746_v58 = vor.u32 %v1918_v55, %v1745_v53  ;;  %v880_v53 = vld [vmem:[%s2662_s14] sm:$0x7f] }
 0x263   :  { %v728_v61 = vmax.f32 %v725_v60, 0.0  ;;  %v1647_v60 = vld [vmem:[%s2661_s7 + $0x8c] sm:$0xf0]  ;;  %v884_v55 = vperm.slane %v880_v53, 2  ;;  %v887_v12 = vperm.slane %v880_v53, 5 }
 0x264   :  { %v1650_v4 = vor.u32 %v1892_v57, %v1647_v60  ;;  %1226 = vmatpush.bf16.msrb.mxu2 %v1714_v3  ;;  %v1747_v57 = vld [vmem:[%s2661_s7 + $0x144] sm:$0xf0]  ;;  %v1753_v60 = vld [vmem:[%s2661_s7 + $0x130] sm:$0xf]  ;;  %1238 = vmatpush.bf16.msrb.mxu3 %v1746_v58  ;;  %v1911_v3 = vld [vmem:[%s2661_s7 + $0x108] sm:$0xf0] }
 0x265   :  { %v729_v62 = vpack.c.bf16 %v728_v61, %v728_v61  ;;  %v1653_v61 = vld [vmem:[%s2661_s7 + $0x78] sm:$0xf]  ;;  %v1750_v59 = vor.u32 %v1915_v56, %v1747_v57  ;;  %v1718_v6 = vor.u32 %v1911_v3, %v1717_v1 }
 0x266   :  { %1202 = vmatpush.bf16.msra.mxu0 %v1650_v4  ;;  %v1908_v4 = vld [vmem:[%s2661_s7 + $0xf4] sm:$0xf] }
 0x267   :  { %1569 = vmatmul.msk.bf16.vlgmr.msra.gmra.mxu1 %vm707_vm3, %v729_v62  ;;  %v1896_v62 = vld [vmem:[%s2661_s7 + $0x90] sm:$0xf0] }
 0x268   :  { %v726_v63 = vpop.f32.mrf.mxu2  ;;  %v1654_v5 = vor.u32 %v1896_v62, %v1653_v61  ;;  %1227 = vmatpush.bf16.msrb.mxu2 %v1686_v16  ;;  %v1919_v61 = vld [vmem:[%s2661_s7 + $0x148] sm:$0xf0]  ;;  %1239 = vmatpush.bf16.msrb.mxu3 %v1718_v6  ;;  %v1697_v16 = vld [vmem:[%s2661_s7 + $0xc0] sm:$0xf] }
 0x269   :  { %v1938_v63 = vld [vmem:[%s2658_s12] ss:$0 sm:$0xff]  ;;  %v1754_v62 = vor.u32 %v1919_v61, %v1753_v60  ;;  %v882_v61 = vperm.slane %v880_v53, 0 }
 0x26a   :  { %1215 = vmatpush.bf16.msrb.mxu1 %v1654_v5  ;;  %1203 = vmatpush.bf16.msra.mxu0 %v1622_v18  ;;  %v1719_v5 = vld [vmem:[%s2661_s7 + $0x10c] sm:$0xf0]  ;;  %v1694_v18 = vor.u32 %v1901_v13, %v1691_v15  ;;  %v888_v15 = vperm.slane %v880_v53, 6 }
 0x26b   :  { %v1722_v7 = vor.u32 %v1908_v4, %v1719_v5 }
 0x26c   :  { %1228 = vmatpush.bf16.msrb.mxu2 %v1658_v41  ;;  %1240 = vmatpush.bf16.msrb.mxu3 %v1690_v14  ;;  %v1607_v41 = vld [vmem:[%s2661_s7 + $0x2c] sm:$0xf0] }
 0x26e   :  { %1216 = vmatpush.bf16.msrb.mxu1 %v1626_v19  ;;  %1204 = vmatpush.bf16.msra.mxu0 %v1594_v34  ;;  %v1891_v34 = vld [vmem:[%s2661_s7 + $0x68] sm:$0xf0] }
 0x26f   :  { %v1642_v37 = vor.u32 %v1891_v34, %v1641_v33 }
 0x270   :  { %1229 = vmatpush.bf16.msrb.mxu2 %v1630_v54  ;;  %v883_v54 = vperm.slane %v880_v53, 1 }
 0x272   :  { %1217 = vmatpush.bf16.msrb.mxu1 %v1598_v35  ;;  %1249 = vmatpush.bf16.msrb.mxu0 %v1806_v38  ;;  %v1605_v38 = vld [vmem:[%s2661_s7 + $0x10] sm:$0xf] }
 0x273   :  { %v1606_v44 = vor.u32 %v1883_v39, %v1605_v38 }
 0x276   :  { %1262 = vmatpush.bf16.msra.mxu1 %v1810_v40  ;;  %1250 = vmatpush.bf16.msrb.mxu0 %v1778_v49  ;;  %v1880_v40 = vld [vmem:[%s2661_s7 + $0x14] sm:$0xf] }
 0x277   :  { %v1610_v45 = vor.u32 %v1880_v40, %v1607_v41 }
 0x27a   :  { %1263 = vmatpush.bf16.msra.mxu1 %v1782_v50  ;;  %1251 = vmatpush.bf16.msrb.mxu0 %v1750_v59 }
 0x27e   :  { %1264 = vmatpush.bf16.msra.mxu1 %v1754_v62  ;;  %1252 = vmatpush.bf16.msrb.mxu0 %v1722_v7 }
 0x282   :  { %1265 = vmatpush.bf16.msra.mxu1 %v1726_v10  ;;  %1253 = vmatpush.bf16.msrb.mxu0 %v1694_v18 }
 0x286   :  { %1254 = vmatpush.bf16.msrb.mxu0 %v1666_v27  ;;  %v886_v27 = vperm.slane %v880_v53, 4 }
 0x2e4   :  { %v756_v17 = vpop.f32.mrf.mxu1 }
 0x2e5   :  { %v757_v23 = vadd.f32 %v1938_v63, %v756_v17  ;;  %v1879_v63 = vld [vmem:[%s2661_s7 + $0xc] sm:$0xf]  ;;  %v1905_v17 = vld [vmem:[%s2661_s7 + $0xd8] sm:$0xf0] }
 0x2e6   :  { %v1602_v2 = vor.u32 %v1879_v63, %v1599_v0  ;;  %v1698_v19 = vor.u32 %v1905_v17, %v1697_v16  ;;  %v885_v63 = vperm.slane %v880_v53, 3 }
 0x2e7   :  { %v760_v30 = vmax.f32 %v757_v23, 0.0  ;;  %v1662_v23 = vor.u32 %v1897_v21, %v1661_v20 }
 0x2e8   :  { %1230 = vmatpush.bf16.msrb.mxu2 %v1602_v2  ;;  %1266 = vmatpush.bf16.msra.mxu1 %v1698_v19 }
 0x2e9   :  { %v761_v36 = vpack.c.bf16 %v760_v30, %v760_v30  ;;  %v1890_v30 = vld [vmem:[%s2661_s7 + $0x60] sm:$0xf0]  ;;  %1241 = vmatpush.bf16.msrb.mxu3 %v1662_v23 }
 0x2ea   :  { %v1634_v35 = vor.u32 %v1890_v30, %v1633_v29 }
 0x2eb   :  { %1586 = vmatmul.msk.bf16.vlgmr.msra.gmra.mxu2 %vm677_vm2, %v761_v36  ;;  %v1638_v36 = vor.u32 %v1887_v31, %v1635_v32 }
 0x2ec   :  { %v758_v47 = vpop.f32.mrf.mxu1  ;;  %1267 = vmatpush.bf16.msra.mxu1 %v1670_v28 }
 0x2ed   :  { %1242 = vmatpush.bf16.msrb.mxu3 %v1634_v35  ;;  %1255 = vmatpush.bf16.msrb.mxu0 %v1638_v36  ;;  %v1939_v47 = vld [vmem:[%s2660_s13] ss:$0 sm:$0xff] }
 0x2f0   :  { %1268 = vmatpush.bf16.msra.mxu1 %v1642_v37 }
 0x2f1   :  { %1243 = vmatpush.bf16.msrb.mxu3 %v1606_v44  ;;  %1256 = vmatpush.bf16.msrb.mxu0 %v1610_v45 }
 0x2f4   :  { %1269 = vmatpush.bf16.msra.mxu1 %v1614_v46 }
 0x36e   :  { %v810_v48 = vpop.f32.mrf.mxu2 }
 0x36f   :  { %v811_v49 = vadd.f32 %v1939_v47, %v810_v48 }
 0x371   :  { %v814_v50 = vmax.f32 %v811_v49, 0.0 }
 0x373   :  { %v815_v51 = vpack.c.bf16 %v814_v50, %v814_v50 }
 0x375   :  { %1192 = vmatmul.bf16.vlgmr.msra.gmra.mxu3 %v815_v51  ;;  %1205 = vmatmul.bf16.vlgmr.msra.gmra.mxu0 %v815_v51 }
 0x376   :  { %1218 = vmatmul.bf16.vlgmr.msrb.gmra.mxu1 %v815_v51  ;;  %1231 = vmatmul.bf16.vlgmr.msrb.gmra.mxu2 %v815_v51  ;;  %v812_v52 = vpop.f32.mrf.mxu2 }
 0x385   :  { %1244 = vmatmul.bf16.vlgmr.msrb.gmra.mxu3 %v815_v51  ;;  %1257 = vmatmul.bf16.vlgmr.msrb.gmra.mxu0 %v815_v51 }
 0x386   :  { %1270 = vmatmul.bf16.vlgmr.msra.gmra.mxu1 %v815_v51 }
 0x3f2   :  { %v1206_v56 = vpop.f32.mrf.mxu0 }
 0x3f3   :  { %v1207_v57 = vadd.f32 %v1206_v56, %v883_v54  ;;  %v1219_v58 = vpop.f32.mrf.mxu1 }
 0x3f4   :  { %v1220_v59 = vadd.f32 %v1219_v58, %v884_v55 }
 0x3f5   :  { %v1276_v60 = vmul.f32 0.5, %v1207_v57 }
 0x3f6   :  { %v1277_v62 = vmul.f32 0.5, %v1220_v59 }
 0x3f7   :  { %1940 = vtanh.f32 %v1276_v60 }
 0x3f8   :  { %1942 = vtanh.f32 %v1277_v62  ;;  %v1193_v0 = vpop.f32.mrf.mxu3 }
 0x3f9   :  { %v1194_v1 = vadd.f32 %v1193_v0, %v882_v61  ;;  %v1232_v2 = vpop.f32.mrf.mxu2 }
 0x3fa   :  { %v1233_v3 = vadd.f32 %v1232_v2, %v885_v63  ;;  %v1208_v4 = vpop.f32.mrf.mxu0 }
 0x3fb   :  { %v1275_v5 = vmul.f32 0.5, %v1194_v1  ;;  %v1221_v6 = vpop.f32.mrf.mxu1 }
 0x3fc   :  { %v1278_v7 = vmul.f32 0.5, %v1233_v3 }
 0x3fd   :  { %v1941_v8 = vpop.eup %1940  ;;  %1944 = vtanh.f32 %v1275_v5 }
 0x3fe   :  { %v1943_v9 = vpop.eup %1942  ;;  %v1290_v10 = vadd.f32 1.0, %v1941_v8  ;;  %1946 = vtanh.f32 %v1278_v7 }
 0x3ff   :  { %v1291_v11 = vadd.f32 1.0, %v1943_v9 }
 0x400   :  { %v1297_v13 = vmul.f32 0.5, %v1290_v10  ;;  %v1195_v14 = vpop.f32.mrf.mxu3 }
 0x401   :  { %v1298_v16 = vmul.f32 0.5, %v1291_v11  ;;  %v1234_v17 = vpop.f32.mrf.mxu2 }
 0x402   :  { %1304 = vst [vmem:[%s2663_s15 + $0x8] sm:$0xff] %v1297_v13  ;;  %v1258_v18 = vpop.f32.mrf.mxu0 }
 0x403   :  { %v1945_v19 = vpop.eup %1944  ;;  %1305 = vst [vmem:[%s2663_s15 + $0x10] sm:$0xff] %v1298_v16  ;;  %v1259_v20 = vadd.f32 %v1258_v18, %v887_v12  ;;  %v1271_v21 = vpop.f32.mrf.mxu1 }
 0x404   :  { %v1947_v22 = vpop.eup %1946  ;;  %v1289_v23 = vadd.f32 1.0, %v1945_v19  ;;  %v1272_v24 = vadd.f32 %v1271_v21, %v888_v15 }
 0x405   :  { %v1292_v25 = vadd.f32 1.0, %v1947_v22  ;;  %v1280_v26 = vmul.f32 0.5, %v1259_v20 }
 0x406   :  { %v1296_v28 = vmul.f32 0.5, %v1289_v23  ;;  %v1281_v29 = vmul.f32 0.5, %v1272_v24 }
 0x407   :  { %v1299_v30 = vmul.f32 0.5, %v1292_v25  ;;  %1948 = vtanh.f32 %v1280_v26 }
 0x408   :  { %1303 = vst [vmem:[%s2663_s15] sm:$0xff] %v1296_v28  ;;  %1950 = vtanh.f32 %v1281_v29  ;;  %v1245_v31 = vpop.f32.mrf.mxu3 }
 0x409   :  { %1306 = vst [vmem:[%s2663_s15 + $0x18] sm:$0xff] %v1299_v30  ;;  %v1246_v32 = vadd.f32 %v1245_v31, %v886_v27 }
 0x40a   :  { %v1260_v33 = vpop.f32.mrf.mxu0 }
 0x40b   :  { %v1279_v34 = vmul.f32 0.5, %v1246_v32  ;;  %v1273_v35 = vpop.f32.mrf.mxu1 }
 0x40d   :  { %v1949_v36 = vpop.eup %1948  ;;  %1952 = vtanh.f32 %v1279_v34 }
 0x40e   :  { %v1951_v37 = vpop.eup %1950  ;;  %v1294_v38 = vadd.f32 1.0, %v1949_v36 }
 0x40f   :  { %v1295_v39 = vadd.f32 1.0, %v1951_v37 }
 0x410   :  { %v1301_v40 = vmul.f32 0.5, %v1294_v38  ;;  %v1247_v41 = vpop.f32.mrf.mxu3 }
 0x411   :  { %v1302_v42 = vmul.f32 0.5, %v1295_v39 }
 0x412   :  { %1308 = vst [vmem:[%s2663_s15 + $0x28] sm:$0xff] %v1301_v40 }
 0x413   :  { %v1953_v43 = vpop.eup %1952  ;;  %1309 = vst.msk [vmem:[%s2663_s15 + $0x30] sm:$0xff] %vm461_vm0, %v1302_v42 }
 0x414   :  { %v1293_v44 = vadd.f32 1.0, %v1953_v43 }
 0x416   :  { %v1300_v45 = vmul.f32 0.5, %v1293_v44 }
 0x418   :  { %1307 = vst [vmem:[%s2663_s15 + $0x20] sm:$0xff] %v1300_v45 }

</bundles_post_ra>
